<compile_context>
chip_gen: v7x
topology: tpu7x:2x2x1
jax: 0.10.0
libtpu: 0.0.40
codegen_flags: <defaults>
</compile_context>

<pallas_src>
import functools

import jax
import jax.numpy as jnp
import numpy as np
from jax.experimental import pallas as pl
from jax.experimental.pallas import tpu as pltpu


def _round_up(v: int, m: int) -> int:
    return ((v + m - 1) // m) * m


def _averaging_matrix(full: int, cells: int) -> np.ndarray:
    """A[i, p] = 1/|cell_i| if pixel p falls in lattice cell i (uniform partition)."""
    idx = np.minimum((np.arange(full) * cells) // full, cells - 1)   # pixel -> cell
    a = np.zeros((cells, full), dtype=np.float32)
    a[idx, np.arange(full)] = 1.0
    counts = a.sum(axis=1, keepdims=True)
    return a / np.maximum(counts, 1.0)


def _lattice_kernel(x_ref, m_ref, o_ref, acc_ref):
    """out[p, :] += x[p, :] @ kron(A_h, A_w)^T  (f32 accumulation over K blocks).

    x_ref  : (B, tk)   block of flattened planes (input dtype)
    m_ref  : (tk, S)   kron(A_h, A_w)^T block (VMEM-resident when nk == 1)
    o_ref  : (B, S)    output block (input dtype)
    acc_ref: (B, S)    f32 accumulator scratch
    """
    k = pl.program_id(1)

    @pl.when(k == 0)
    def _():
        acc_ref[...] = jnp.zeros_like(acc_ref)

    acc_ref[...] += jnp.dot(x_ref[...], m_ref[...],
                            preferred_element_type=jnp.float32)

    @pl.when(k == pl.num_programs(1) - 1)
    def _():
        o_ref[...] = acc_ref[...].astype(o_ref.dtype)


@functools.partial(jax.jit, static_argnames=("seed_h", "seed_w", "seed_level"))
def lattice_superpixel(x, *, seed_h: int, seed_w: int, seed_level: int = 1):
    # TODO(synk): seed_level accepted for API parity but unused (closed-source
    # CUDA semantics unknown).
    N, C, H, W = x.shape
    P = N * C
    HW = H * W
    S = seed_h * seed_w
    dtype = x.dtype
    itemsize = dtype.itemsize

    # Weight dtype: match bf16 inputs (single-pass bf16 MXU, no in-kernel
    # up-cast of the big x block); exact f32 weights otherwise.
    w_dtype = jnp.bfloat16 if dtype == jnp.bfloat16 else jnp.float32
    w_itemsize = jnp.dtype(w_dtype).itemsize

    # ---- Hardware-aware VMEM budgets ---------------------------------------
    try:
        vmem_cap = int(pltpu.get_tpu_info().vmem_capacity_bytes)
    except Exception:                       # unknown chip / interpret mode
        vmem_cap = 64 << 20                 # v7x-safe lower bound
    budget = min(int(vmem_cap * 0.6), 64 << 20)     # working-set target
    m_cap = min(budget // 4, 12 << 20)               # resident kron weight cap
    in_target = min(budget // 4, 16 << 20)           # per-buffer input block

    # ---- K (reduction) tiling: only when the kron weight is large and H*W
    # splits cleanly on 128-lane boundaries (keeps every block lane-legal and
    # avoids any OOB reads contributing to the accumulation).
    m_bytes = HW * S * w_itemsize
    nk = 1
    if m_bytes > m_cap and HW % 128 == 0:
        want = pl.cdiv(m_bytes, m_cap)
        for cand in range(want, HW // 128 + 1):
            if HW % cand == 0 and (HW // cand) % 128 == 0:
                nk = cand
                break
    tk = HW // nk

    # ---- P (plane) tiling: large blocks to amortize per-step overhead, but
    # keep >= ~8 grid steps when P allows (v7x has 2 TensorCores).
    row_bytes = tk * itemsize
    b_target = max(1, in_target // max(row_bytes, 1))
    b_split = _round_up(max(1, pl.cdiv(P, 8)), 8)
    B = min(b_target, b_split, 4096)
    B = max(8, (B // 8) * 8)                # sublane-multiple block rows
    B = min(B, _round_up(P, 8))
    num_p_blocks = pl.cdiv(P, B)

    # ---- Host-built kron(A_h, A_w)^T weight (H*W, seed_h*seed_w). ----------
    a_h = _averaging_matrix(H, seed_h)                  # (seed_h, H)
    a_w = _averaging_matrix(W, seed_w)                  # (seed_w, W)
    m = jnp.asarray(np.kron(a_h, a_w).T, dtype=w_dtype)  # (H*W, S)

    # ---- Free views only: no pad / transpose / copy of the input. ----------
    x_flat = x.reshape(P, HW)

    # ---- VMEM limit accounting (double-buffered in/weight/out + scratch). --
    in_blk = B * tk * itemsize
    m_blk = tk * S * w_itemsize
    out_blk = B * S * itemsize
    acc_bytes = B * S * 4
    vmem_need = 2 * in_blk + 2 * m_blk + 2 * out_blk + acc_bytes + (2 << 20)
    vmem_limit = int(min(max(vmem_need, 16 << 20), int(vmem_cap * 0.9)))

    m_traffic = m_bytes if nk == 1 else num_p_blocks * m_bytes
    flops = 2 * P * HW * S
    bytes_accessed = P * HW * itemsize + P * S * itemsize + m_traffic

    out_flat = pl.pallas_call(
        _lattice_kernel,
        out_shape=jax.ShapeDtypeStruct((P, S), dtype),
        grid=(num_p_blocks, nk),
        in_specs=[
            pl.BlockSpec((B, tk), lambda i, k: (i, k)),
            pl.BlockSpec((tk, S), lambda i, k: (k, 0)),   # resident when nk == 1
        ],
        out_specs=pl.BlockSpec((B, S), lambda i, k: (i, 0)),
        scratch_shapes=[pltpu.VMEM((B, S), jnp.float32)],
        compiler_params=pltpu.CompilerParams(
            dimension_semantics=("parallel", "arbitrary"),
            vmem_limit_bytes=vmem_limit,
        ),
        cost_estimate=pl.CostEstimate(flops=flops, transcendentals=0,
                                      bytes_accessed=bytes_accessed),
    )(x_flat, m)

    return out_flat.reshape(N, C, seed_h, seed_w)


def _reference(x, seed_h, seed_w):
    """Pure-JAX reference: mean over each lattice cell."""
    ah = jnp.asarray(_averaging_matrix(x.shape[2], seed_h), jnp.float32)
    aw = jnp.asarray(_averaging_matrix(x.shape[3], seed_w), jnp.float32)
    return jnp.einsum("sh,nchw,tw->ncst", ah, x.astype(jnp.float32), aw).astype(x.dtype)


if __name__ == "__main__":
    key = jax.random.PRNGKey(0)

    # Module "parameters" (from __init__): seed_h, seed_w, seed_level.
    seed_h, seed_w, seed_level = 4, 4, 1
    x = jax.random.normal(key, (2, 4, 16, 16), dtype=jnp.float32)   # NCHW
    out = lattice_superpixel(x, seed_h=seed_h, seed_w=seed_w, seed_level=seed_level)
    out = jax.block_until_ready(out)
    ref = _reference(x, seed_h, seed_w)
    assert out.shape == (2, 4, seed_h, seed_w), out.shape
    assert jnp.allclose(out, ref, atol=1e-5, rtol=1e-5), "mismatch vs reference"

    # Second config: spatial dims not divisible by the seed lattice.
    sh2, sw2 = 4, 5
    x2 = jax.random.normal(jax.random.PRNGKey(1), (2, 4, 18, 22), dtype=jnp.float32)
    out2 = lattice_superpixel(x2, seed_h=sh2, seed_w=sw2, seed_level=2)
    out2 = jax.block_until_ready(out2)
    ref2 = _reference(x2, sh2, sw2)
    assert out2.shape == (2, 4, sh2, sw2), out2.shape
    assert jnp.allclose(out2, ref2, atol=1e-5, rtol=1e-5), "mismatch vs reference (case 2)"

    print("KERNEL_OK")
</pallas_src>

<mosaic_0001>
module attributes {stable_mosaic.version = 11 : i64} {
  func.func @_lattice_kernel(%arg0: i32, %arg1: i32, %arg2: memref<8x256xf32, #tpu.memory_space<vmem>>, %arg3: memref<256x16xf32, #tpu.memory_space<vmem>>, %arg4: memref<8x16xf32, #tpu.memory_space<vmem>>, %arg5: memref<8x16xf32, #tpu.memory_space<vmem>>) attributes {dimension_semantics = [#tpu.dimension_semantics<parallel>, #tpu.dimension_semantics<arbitrary>], iteration_bounds = array<i64: 1, 1>, scalar_prefetch = 0 : i64, scratch_operands = 1 : i64, tpu.core_type = #tpu.core_type<tc>, window_params = [{transform_indices = @transform_0, window_bounds = array<i64: 8, 256>}, {transform_indices = @transform_1, window_bounds = array<i64: 256, 16>}, {transform_indices = @transform_2, window_bounds = array<i64: 8, 16>}]} {
    %c0_i32 = arith.constant 0 : i32
    %0 = arith.cmpi eq, %arg1, %c0_i32 : i32
    %1 = arith.extui %0 : i1 to i32
    %c0_i32_0 = arith.constant 0 : i32
    %2 = arith.cmpi ne, %1, %c0_i32_0 : i32
    scf.if %2 {
      %cst_10 = arith.constant 0.000000e+00 : f32
      %12 = vector.broadcast %cst_10 : f32 to vector<8x16xf32>
      %c0_11 = arith.constant 0 : index
      %c0_12 = arith.constant 0 : index
      %13 = vector.load %arg5[%c0_11, %c0_12] : memref<8x16xf32, #tpu.memory_space<vmem>>, vector<8x16xf32>
      tpu.vector_store %arg5[%c0_11, %c0_12], %12 {strides = array<i32>} : memref<8x16xf32, #tpu.memory_space<vmem>>, vector<8x16xf32>,
    } else {
    }
    %c0 = arith.constant 0 : index
    %c0_1 = arith.constant 0 : index
    %3 = vector.load %arg5[%c0, %c0_1] : memref<8x16xf32, #tpu.memory_space<vmem>>, vector<8x16xf32>
    %c0_2 = arith.constant 0 : index
    %c0_3 = arith.constant 0 : index
    %4 = vector.load %arg2[%c0_2, %c0_3] : memref<8x256xf32, #tpu.memory_space<vmem>>, vector<8x256xf32>
    %c0_4 = arith.constant 0 : index
    %c0_5 = arith.constant 0 : index
    %5 = vector.load %arg3[%c0_4, %c0_5] : memref<256x16xf32, #tpu.memory_space<vmem>>, vector<256x16xf32>
    %cst = arith.constant dense<0.000000e+00> : vector<8x16xf32>
    %6 = tpu.matmul %4, %5, %cst {dimension_numbers = #tpu.dot_dimension_numbers<[1], [0], [0], [1], [0, 0, 1, 1], [], []>} : vector<8x256xf32>, vector<256x16xf32>, vector<8x16xf32> -> vector<8x16xf32>
    %7 = arith.addf %3, %6 : vector<8x16xf32>
    %c0_6 = arith.constant 0 : index
    %c0_7 = arith.constant 0 : index
    %8 = vector.load %arg5[%c0_6, %c0_7] : memref<8x16xf32, #tpu.memory_space<vmem>>, vector<8x16xf32>
    tpu.vector_store %arg5[%c0_6, %c0_7], %7 {strides = array<i32>} : memref<8x16xf32, #tpu.memory_space<vmem>>, vector<8x16xf32>,
    %c0_i32_8 = arith.constant 0 : i32
    %9 = arith.cmpi eq, %arg1, %c0_i32_8 : i32
    %10 = arith.extui %9 : i1 to i32
    %c0_i32_9 = arith.constant 0 : i32
    %11 = arith.cmpi ne, %10, %c0_i32_9 : i32
    scf.if %11 {
      %c0_10 = arith.constant 0 : index
      %c0_11 = arith.constant 0 : index
      %12 = vector.load %arg5[%c0_10, %c0_11] : memref<8x16xf32, #tpu.memory_space<vmem>>, vector<8x16xf32>
      %c0_12 = arith.constant 0 : index
      %c0_13 = arith.constant 0 : index
      %13 = vector.load %arg4[%c0_12, %c0_13] : memref<8x16xf32, #tpu.memory_space<vmem>>, vector<8x16xf32>
      tpu.vector_store %arg4[%c0_12, %c0_13], %12 {strides = array<i32>} : memref<8x16xf32, #tpu.memory_space<vmem>>, vector<8x16xf32>,
    } else {
    }
    return
  }
  func.func @transform_0(%arg0: i32, %arg1: i32) -> (i32, i32) {
    %c0_i32 = arith.constant 0 : i32
    return %arg0, %arg1 : i32, i32
  }
  func.func @transform_1(%arg0: i32, %arg1: i32) -> (i32, i32) {
    %c0_i32 = arith.constant 0 : i32
    %c0_i32_0 = arith.constant 0 : i32
    return %arg1, %c0_i32 : i32, i32
  }
  func.func @transform_2(%arg0: i32, %arg1: i32) -> (i32, i32) {
    %c0_i32 = arith.constant 0 : i32
    %c0_i32_0 = arith.constant 0 : i32
    return %arg0, %c0_i32 : i32, i32
  }
}

</mosaic_0001>

<bundles_post_ra>
// kernel: lattice_superpixel.1
= control target key start
LH: loop header
LB: loop body
LE: loop exit
PB: predicated region body
PF: predicated region fallthrough
CT: control target
= control target key end

     0   :  { %7 = vsyncpa [#allocation4], 0  ;;  %s244_s9 = smov [#allocation3]   ;;  %s284_s0 = inlined_call_operand.vmem [shape: f32[8,256], index: 0, kind: input, shape index: {}]   ;;  %s285_s1 = inlined_call_operand.hbm [shape: f32[256,16], index: 1, kind: input, shape index: {}]   ;;  %s286_s2 = inlined_call_operand.vmem [shape: f32[8,16], index: 2, kind: output, shape index: {}]  }
   0x1   :  { %s15_s10 = sshll.u32 %s244_s9, 4  ;;  %s220_s13 = scalar_lea.hbm %s285_s1, 4096  ;;  %s16_s10 = int_to_ptr.vmem [resolvable:$true] %s15_s10 }
   0x2   :  { %p221_p0 = scmp.ne.s32.totalorder %s285_s1, %s220_s13  ;;  %p224_p1 = scmp.lt.u32.totalorder %s220_s13, %s285_s1 }
   0x4   :  { %p226_p2 = pnand %p224_p1, %p221_p0 }
   0x6   :  { %229 = shalt.err (!%p226_p2)
}
   0x7   :  { %s230_s18 = scalar_lea.vmem %s16_s10, 4096  ;;  %p235_p4 = scmp.lt.s32.totalorder %s16_s10, %s16_s10 }
   0x8   :  { %p231_p3 = scmp.ne.s32.totalorder %s16_s10, %s230_s18  ;;  %p236_p5 = scmp.lt.s32.totalorder %s230_s18, %s230_s18 }
   0xa   :  { %p237_p6 = por %p236_p5, %p235_p4 }
   0xc   :  { %p238_p7 = pnand %p237_p6, %p231_p3 }
   0xe   :  { %241 = shalt.err (!%p238_p7)
}
   0xf   :  { %s245_s19 = smov 128   ;;  %s246_s20 = smov 8  }
  0x10   :  { %21 = dma.hbm_to_vmem [thread:$0]  %s285_s1, 4096, %s16_s10, [#allocation4], %s245_s19, %s245_s19, %s246_s20  }
  0x11   :  { %242 = dma.done.wait [#allocation4], 4096  }
  0x12   :  { %243 = vsyncadd [#allocation4], 4294963200  ;;  %v50_v0 = vld [vmem:[#allocation3 + $0x80] sm:$0xff]  ;;  %v51_v1 = vld [vmem:[#allocation3 + $0x88] sm:$0xff]  ;;  %vm29_vm0 = vcmask 130048   ;;  %v247_v50 = vmov 0.0  }
  0x13   :  { %v34_v2 = vld [vmem:[#allocation3] sm:$0xff]  ;;  %v184_v3 = vpack.c.bf16 %v51_v1, %v50_v0  ;;  %v35_v4 = vld [vmem:[#allocation3 + $0x8] sm:$0xff]  ;;  %v52_v5 = vld [vmem:[#allocation3 + $0x90] sm:$0xff]  ;;  %30 = vst.msk [vmem:[#allocation2] sm:$0xff] %vm29_vm0, %v247_v50 }
  0x14   :  { %v53_v6 = vld [vmem:[#allocation3 + $0x98] sm:$0xff]  ;;  %v186_v7 = vpack.c.bf16 %v35_v4, %v34_v2  ;;  %v36_v9 = vld [vmem:[#allocation3 + $0x10] sm:$0xff]  ;;  %v54_v11 = vld [vmem:[#allocation3 + $0xa0] sm:$0xff] }
  0x15   :  { %v188_v8 = vpack.c.bf16 %v53_v6, %v52_v5  ;;  %v37_v10 = vld [vmem:[#allocation3 + $0x18] sm:$0xff]  ;;  %185 = vmatprep.subr.bf16.mxu0 %v184_v3  ;;  %v55_v12 = vld [vmem:[#allocation3 + $0xa8] sm:$0xff]  ;;  %v38_v15 = vld [vmem:[#allocation3 + $0x20] sm:$0xff] }
  0x16   :  { %187 = vmatpush3.bf16.msra.mxu0 %v186_v7  ;;  %v190_v13 = vpack.c.bf16 %v37_v10, %v36_v9  ;;  %v192_v14 = vpack.c.bf16 %v55_v12, %v54_v11  ;;  %v39_v16 = vld [vmem:[#allocation3 + $0x28] sm:$0xff]  ;;  %v56_v17 = vld [vmem:[#allocation3 + $0xb0] sm:$0xff]  ;;  %v57_v18 = vld [vmem:[#allocation3 + $0xb8] sm:$0xff] }
  0x17   :  { %189 = vmatprep.subr.bf16.mxu0 %v188_v8  ;;  %v194_v19 = vpack.c.bf16 %v39_v16, %v38_v15  ;;  %v196_v20 = vpack.c.bf16 %v57_v18, %v56_v17  ;;  %v40_v21 = vld [vmem:[#allocation3 + $0x30] sm:$0xff]  ;;  %v41_v22 = vld [vmem:[#allocation3 + $0x38] sm:$0xff]  ;;  %v58_v23 = vld [vmem:[#allocation3 + $0xc0] sm:$0xff] }
  0x18   :  { %v59_v24 = vld [vmem:[#allocation3 + $0xc8] sm:$0xff]  ;;  %v33_v25 = vld [vmem:[%s284_s0 + $0x8] sm:$0xff]  ;;  %v198_v26 = vpack.c.bf16 %v41_v22, %v40_v21  ;;  %v60_v30 = vld [vmem:[#allocation3 + $0xd0] sm:$0xff] }
  0x19   :  { %130 = vmatprep.mubr.f32.mxu0 %v33_v25  ;;  %v200_v27 = vpack.c.bf16 %v59_v24, %v58_v23  ;;  %v42_v28 = vld [vmem:[#allocation3 + $0x40] sm:$0xff]  ;;  %v43_v29 = vld [vmem:[#allocation3 + $0x48] sm:$0xff]  ;;  %v61_v31 = vld [vmem:[#allocation3 + $0xd8] sm:$0xff] }
  0x1a   :  { %191 = vmatpush3.bf16.msra.mxu0 %v190_v13  ;;  %v202_v32 = vpack.c.bf16 %v43_v29, %v42_v28  ;;  %v204_v33 = vpack.c.bf16 %v61_v31, %v60_v30  ;;  %v44_v34 = vld [vmem:[#allocation3 + $0x50] sm:$0xff]  ;;  %v45_v35 = vld [vmem:[#allocation3 + $0x58] sm:$0xff]  ;;  %v62_v36 = vld [vmem:[#allocation3 + $0xe0] sm:$0xff] }
  0x1b   :  { %193 = vmatprep.subr.bf16.mxu0 %v192_v14  ;;  %v63_v37 = vld [vmem:[#allocation3 + $0xe8] sm:$0xff]  ;;  %v206_v38 = vpack.c.bf16 %v45_v35, %v44_v34  ;;  %v46_v40 = vld [vmem:[#allocation3 + $0x60] sm:$0xff]  ;;  %v64_v42 = vld [vmem:[#allocation3 + $0xf0] sm:$0xff] }
  0x1c   :  { %v208_v39 = vpack.c.bf16 %v63_v37, %v62_v36  ;;  %v47_v41 = vld [vmem:[#allocation3 + $0x68] sm:$0xff]  ;;  %v65_v43 = vld [vmem:[#allocation3 + $0xf8] sm:$0xff]  ;;  %v48_v46 = vld [vmem:[#allocation3 + $0x70] sm:$0xff] }
  0x1d   :  { %v210_v44 = vpack.c.bf16 %v47_v41, %v46_v40  ;;  %v212_v45 = vpack.c.bf16 %v65_v43, %v64_v42  ;;  %v49_v47 = vld [vmem:[#allocation3 + $0x78] sm:$0xff] }
  0x1e   :  { %195 = vmatpush3.bf16.msra.mxu0 %v194_v19  ;;  %v214_v48 = vpack.c.bf16 %v49_v47, %v48_v46  ;;  %v32_v49 = vld [vmem:[%s284_s0] sm:$0xff] }
  0x1f   :  { %197 = vmatprep.subr.bf16.mxu0 %v196_v20  ;;  %v31_v52 = vld [vmem:[#allocation2] sm:$0xff] }
  0x22   :  { %199 = vmatpush3.bf16.msra.mxu0 %v198_v26 }
  0x23   :  { %201 = vmatprep.subr.bf16.mxu0 %v200_v27 }
  0x26   :  { %203 = vmatpush3.bf16.msra.mxu0 %v202_v32 }
  0x27   :  { %205 = vmatprep.subr.bf16.mxu0 %v204_v33 }
  0x2a   :  { %207 = vmatpush3.bf16.msra.mxu0 %v206_v38 }
  0x2b   :  { %209 = vmatprep.subr.bf16.mxu0 %v208_v39 }
  0x2e   :  { %211 = vmatpush3.bf16.msra.mxu0 %v210_v44 }
  0x2f   :  { %213 = vmatprep.subr.bf16.mxu0 %v212_v45 }
  0x32   :  { %215 = vmatpush3.bf16.msra.mxu0 %v214_v48 }
  0x35   :  { %131 = vmatmul.mubr.f32.vlgmr.msra.gmra.mrb[0].mxu0 %v32_v49 }
 0x108   :  { %v181_v51 = vpop.f32.mrb[0].mxu0 }
 0x109   :  { %v182_v53 = vpop.f32.mrb[1].mxu0 }
 0x10a   :  { %v183_v54 = vadd.f32 %v182_v53, %v181_v51 }
 0x10c   :  { %v136_v55 = vadd.f32 %v183_v54, %v31_v52 }
 0x10e   :  { %138 = vst.msk [vmem:[#allocation2] sm:$0xff] %vm29_vm0, %v136_v55 }
 0x115   :  { %v142_v56 = vld [vmem:[#allocation2] sm:$0xff] }
 0x116   :  { %143 = vst.msk [vmem:[%s286_s2] sm:$0xff] %vm29_vm0, %v142_v56 }
 0x117   :  { %148 = vsyncpa [#allocation4], 1 }

</bundles_post_ra>
